<compile_context>
chip_gen: v7x
topology: tpu7x:2x2x1
jax: 0.10.0
libtpu: 0.0.40
codegen_flags: <defaults>
</compile_context>

<pallas_src>
import functools

import numpy as np

import jax
import jax.numpy as jnp
from jax import lax
from jax.experimental import pallas as pl
from jax.experimental.pallas import tpu as pltpu

_INV_2_24 = float(1.0 / (1 << 24))
_GOLDEN = 0x9E3779B9        # seed scrambler
_TRAIN_STREAM = 0x51633E2D  # decorrelate train vs eval streams
_EVAL_STREAM = 0x2545F491

_IMGS_PER_TILE = 8     # 8 images packed per (8,128) tile
_DET_SLOTS = 16        # detections padded 10 -> 16 lanes per image
_NUM_DETS = 10
_MAX_BLOCK_TILES = 1024  # 4 MiB / block; x2 pipeline buffers = 8 MiB VMEM


def _hash_u32(x):
    """lowbias32-style integer hash of a uint32 counter (plain VPU ops)."""
    x = x ^ (x >> jnp.uint32(16))
    x = x * jnp.uint32(0x7FEB352D)
    x = x ^ (x >> jnp.uint32(15))
    x = x * jnp.uint32(0x846CA68B)
    x = x ^ (x >> jnp.uint32(16))
    return x


def _uniform_from_bits(bits):
    """uint32 random bits -> f32 uniform in [0, 1) with 24-bit resolution."""
    # top 24 bits fit in positive int32, so int32->f32 convert is safe on TPU.
    return (bits >> jnp.uint32(8)).astype(jnp.int32).astype(jnp.float32) * _INV_2_24


# ----------------------------------------------------------------------------
# training kernel: 4 losses = Linear(1,1)(rand(1)) -> one (8,128) vreg; row 0,
# lanes 0..3 carry the values.  The kernel + the 4 scalar slices are folded
# under a single jax.jit in _train_forward (one dispatch per train step).
# ----------------------------------------------------------------------------
def _train_kernel(seed_ref, w_ref, b_ref, out_ref):
    nrow, nlane = out_ref.shape
    base = (seed_ref[0].astype(jnp.uint32) * jnp.uint32(_GOLDEN)
            + jnp.uint32(_TRAIN_STREAM))
    row = lax.broadcasted_iota(jnp.int32, (nrow, nlane), 0).astype(jnp.uint32)
    lane = lax.broadcasted_iota(jnp.int32, (nrow, nlane), 1).astype(jnp.uint32)
    bits = _hash_u32(row * jnp.uint32(nlane) + lane + base)
    x = _uniform_from_bits(bits)
    # nn.Linear(1, 1): y = x * w + b, elementwise on the VPU.
    out_ref[...] = x * w_ref[0] + b_ref[0]


@jax.jit
def _train_forward(seed_arr, w, b):
    out = pl.pallas_call(
        _train_kernel,
        out_shape=jax.ShapeDtypeStruct((8, 128), jnp.float32),
        in_specs=[pl.BlockSpec(memory_space=pltpu.MemorySpace.SMEM)] * 3,
        out_specs=pl.BlockSpec(memory_space=pltpu.MemorySpace.VMEM),
    )(seed_arr, w, b)
    losses = out[0, :4]
    return {
        "loss_classifier": losses[0:1],
        "loss_box_reg": losses[1:2],
        "loss_objectness": losses[2:3],
        "loss_rpn_box_reg": losses[3:4],
    }


# ----------------------------------------------------------------------------
# eval kernel: 8 images packed per lane-dense (8,128) f32 tile.
#   out[g, c, i*16 + d]   c in 0..3 : box coord c of image g*8+i, detection d
#   out[g, 4, i*16 + d]              : score of detection d
#   out[g, 5, i*16 + d]              : label of detection d as 0.0 / 1.0
#   rows 6..7 and det slots 10..15   : unused padding (never read)
# Single random-bits draw per element; labels reuse bit 0 of the hashed word.
# ----------------------------------------------------------------------------
def _eval_kernel(seed_ref, out_ref):
    gb, nrow, nlane = out_ref.shape
    base = (seed_ref[0].astype(jnp.uint32) * jnp.uint32(_GOLDEN)
            + jnp.uint32(_EVAL_STREAM))
    blk_off = (pl.program_id(0) * gb).astype(jnp.uint32)
    shape = (gb, nrow, nlane)
    grp = lax.broadcasted_iota(jnp.int32, shape, 0).astype(jnp.uint32)
    row = lax.broadcasted_iota(jnp.int32, shape, 1).astype(jnp.uint32)
    lane = lax.broadcasted_iota(jnp.int32, shape, 2).astype(jnp.uint32)
    ctr = ((grp + blk_off) * jnp.uint32(nrow * nlane)
           + row * jnp.uint32(nlane) + lane)
    bits = _hash_u32(ctr + base)
    u = _uniform_from_bits(bits)
    labels_f = (bits & jnp.uint32(1)).astype(jnp.int32).astype(jnp.float32)
    out_ref[...] = jnp.where(row == jnp.uint32(5), labels_f, u)


@functools.partial(jax.jit, static_argnums=(1,))
def _eval_forward(seed_arr, batch_size):
    n_tiles = pl.cdiv(batch_size, _IMGS_PER_TILE)          # ceil(B/8) tiles
    block_tiles = min(n_tiles, _MAX_BLOCK_TILES)           # <= 4 MiB / block
    num_blocks = pl.cdiv(n_tiles, block_tiles)             # >= 1; padded grid
    total_tiles = num_blocks * block_tiles                  # pad, sliced on host
    return pl.pallas_call(
        _eval_kernel,
        out_shape=jax.ShapeDtypeStruct((total_tiles, 8, 128), jnp.float32),
        grid=(num_blocks,),
        in_specs=[pl.BlockSpec(memory_space=pltpu.MemorySpace.SMEM)],
        out_specs=pl.BlockSpec((block_tiles, 8, 128), lambda i: (i, 0, 0)),
        compiler_params=pltpu.CompilerParams(
            dimension_semantics=("parallel",)),
    )(seed_arr)


class ObjectDetectionTestModel:
    """JAX/Pallas re-implementation of the PyTorch test module."""

    def __init__(self, key=None):
        if key is None:
            key = jax.random.PRNGKey(0)
        # nn.Linear(1, 1) parameters, deterministic uniform(-1, 1) init.
        kw, kb = jax.random.split(key)
        self.w = jax.random.uniform(kw, (1,), jnp.float32, minval=-1.0, maxval=1.0)
        self.b = jax.random.uniform(kb, (1,), jnp.float32, minval=-1.0, maxval=1.0)
        self.training = True

    def train(self):
        self.training = True
        return self

    def eval(self):
        self.training = False
        return self

    def __call__(self, images, targets=None, seed=0):
        batch_size = len(images)
        seed_arr = jnp.array([seed], dtype=jnp.int32)
        if self.training:
            assert targets is not None and batch_size == len(targets)
            # TODO(synk): torch advances a global RNG across calls; here randoms
            # are a pure function of `seed`, so identical seeds repeat values.
            return _train_forward(seed_arr, self.w, self.b)
        else:
            packed = _eval_forward(seed_arr, batch_size)   # (G_total, 8, 128)
            packed_np = np.asarray(packed)                 # ONE D2H transfer
            n_tiles = -(-batch_size // _IMGS_PER_TILE)
            n_imgs = n_tiles * _IMGS_PER_TILE
            # (tile, row, img_in_group, det_slot)
            r = packed_np[:n_tiles].reshape(n_tiles, 8, _IMGS_PER_TILE, _DET_SLOTS)
            boxes_all = np.ascontiguousarray(
                np.transpose(r[:, 0:4, :, 0:_NUM_DETS], (0, 2, 3, 1))
            ).reshape(n_imgs, _NUM_DETS, 4)[:batch_size]                  # (B,10,4)
            scores_all = np.ascontiguousarray(
                r[:, 4, :, 0:_NUM_DETS]).reshape(n_imgs, _NUM_DETS)[:batch_size]
            labels_all = np.ascontiguousarray(
                r[:, 5, :, 0:_NUM_DETS]).astype(np.int64).reshape(
                    n_imgs, _NUM_DETS)[:batch_size]                       # int64 like torch.randint
            return [
                {
                    "boxes": boxes_all[i],
                    "labels": labels_all[i],
                    "scores": scores_all[i],
                }
                for i in range(batch_size)
            ]


if __name__ == "__main__":
    key = jax.random.PRNGKey(0)
    k_img, k_model = jax.random.split(key)

    B, C, H, W = 2, 3, 16, 16
    images = jax.random.uniform(k_img, (B, C, H, W), dtype=jnp.float32)  # NCHW
    targets = [
        {"boxes": jnp.zeros((1, 4), jnp.float32), "labels": jnp.zeros((1,), jnp.int32)}
        for _ in range(B)
    ]

    model = ObjectDetectionTestModel(k_model)

    # training mode: dict of 4 Linear(1,1)-transformed random losses
    model.train()
    losses = model(images, targets, seed=0)
    jax.block_until_ready(losses)
    assert set(losses.keys()) == {
        "loss_classifier", "loss_box_reg", "loss_objectness", "loss_rpn_box_reg"
    }
    assert losses["loss_classifier"].shape == (1,)

    # eval mode: per-image random detections
    model.eval()
    dets = model(images, seed=1)
    jax.block_until_ready(dets)
    assert len(dets) == B
    assert dets[0]["boxes"].shape == (10, 4)
    assert dets[0]["labels"].shape == (10,)
    assert dets[0]["scores"].shape == (10,)
    assert bool(np.all((dets[0]["labels"] >= 0) & (dets[0]["labels"] < 2)))
    assert bool(np.all((dets[0]["boxes"] >= 0.0) & (dets[0]["boxes"] < 1.0)))
    assert bool(np.all((dets[0]["scores"] >= 0.0) & (dets[0]["scores"] < 1.0)))

    # different images for the two eval samples (distinct counter ranges)
    assert not np.array_equal(dets[0]["boxes"], dets[1]["boxes"])

    print("KERNEL_OK")
</pallas_src>

<mosaic_0001>
module attributes {stable_mosaic.version = 11 : i64} {
  func.func @_train_kernel(%arg0: memref<1xi32, #tpu.memory_space<smem>>, %arg1: memref<1xf32, #tpu.memory_space<smem>>, %arg2: memref<1xf32, #tpu.memory_space<smem>>, %arg3: memref<8x128xf32, #tpu.memory_space<vmem>>) attributes {dimension_semantics = [], scalar_prefetch = 0 : i64, scratch_operands = 0 : i64, tpu.core_type = #tpu.core_type<tc>} {
    %c0 = arith.constant 0 : index
    %0 = memref.load %arg0[%c0] : memref<1xi32, #tpu.memory_space<smem>>
    %c-1640531527_i32 = arith.constant -1640531527 : i32
    %1 = arith.muli %0, %c-1640531527_i32 : i32
    %c1365458477_i32 = arith.constant 1365458477 : i32
    %2 = arith.addi %1, %c1365458477_i32 : i32
    %3 = tpu.iota {dimensions = array<i32: 0>} : vector<8x128xi32>
    %4 = tpu.iota {dimensions = array<i32: 1>} : vector<8x128xi32>
    %c128_i32 = arith.constant 128 : i32
    %5 = vector.broadcast %c128_i32 : i32 to vector<8x128xi32>
    %6 = arith.muli %3, %5 : vector<8x128xi32>
    %7 = arith.addi %6, %4 : vector<8x128xi32>
    %8 = vector.broadcast %2 : i32 to vector<8x128xi32>
    %9 = arith.addi %7, %8 : vector<8x128xi32>
    %c16_i32 = arith.constant 16 : i32
    %10 = vector.broadcast %c16_i32 : i32 to vector<8x128xi32>
    %11 = arith.shrui %9, %10 : vector<8x128xi32>
    %12 = arith.xori %9, %11 : vector<8x128xi32>
    %c2146121005_i32 = arith.constant 2146121005 : i32
    %13 = vector.broadcast %c2146121005_i32 : i32 to vector<8x128xi32>
    %14 = arith.muli %12, %13 : vector<8x128xi32>
    %c15_i32 = arith.constant 15 : i32
    %15 = vector.broadcast %c15_i32 : i32 to vector<8x128xi32>
    %16 = arith.shrui %14, %15 : vector<8x128xi32>
    %17 = arith.xori %14, %16 : vector<8x128xi32>
    %c-2073254261_i32 = arith.constant -2073254261 : i32
    %18 = vector.broadcast %c-2073254261_i32 : i32 to vector<8x128xi32>
    %19 = arith.muli %17, %18 : vector<8x128xi32>
    %c16_i32_0 = arith.constant 16 : i32
    %20 = vector.broadcast %c16_i32_0 : i32 to vector<8x128xi32>
    %21 = arith.shrui %19, %20 : vector<8x128xi32>
    %22 = arith.xori %19, %21 : vector<8x128xi32>
    %c8_i32 = arith.constant 8 : i32
    %23 = vector.broadcast %c8_i32 : i32 to vector<8x128xi32>
    %24 = arith.shrui %22, %23 : vector<8x128xi32>
    %25 = arith.sitofp %24 : vector<8x128xi32> to vector<8x128xf32>
    %cst = arith.constant 5.96046448E-8 : f32
    %26 = vector.broadcast %cst : f32 to vector<8x128xf32>
    %27 = arith.mulf %25, %26 : vector<8x128xf32>
    %c0_1 = arith.constant 0 : index
    %28 = memref.load %arg1[%c0_1] : memref<1xf32, #tpu.memory_space<smem>>
    %29 = vector.broadcast %28 : f32 to vector<8x128xf32>
    %30 = arith.mulf %27, %29 : vector<8x128xf32>
    %c0_2 = arith.constant 0 : index
    %31 = memref.load %arg2[%c0_2] : memref<1xf32, #tpu.memory_space<smem>>
    %32 = vector.broadcast %31 : f32 to vector<8x128xf32>
    %33 = arith.addf %30, %32 : vector<8x128xf32>
    %c0_3 = arith.constant 0 : index
    %c0_4 = arith.constant 0 : index
    %34 = vector.load %arg3[%c0_3, %c0_4] : memref<8x128xf32, #tpu.memory_space<vmem>>, vector<8x128xf32>
    tpu.vector_store %arg3[%c0_3, %c0_4], %33 {strides = array<i32>} : memref<8x128xf32, #tpu.memory_space<vmem>>, vector<8x128xf32>,
    return
  }
}

</mosaic_0001>

<bundles_post_ra>
// kernel: _train_forward.1
= control target key start
LH: loop header
LB: loop body
LE: loop exit
PB: predicated region body
PF: predicated region fallthrough
CT: control target
= control target key end

     0   :  { %v20_v0 = vlaneseq  ;;  %s82_s0 = inlined_call_operand.<no memory space> [shape: s32[1], index: 0, kind: input, shape index: {}]   ;;  %s83_s1 = inlined_call_operand.<no memory space> [shape: f32[1], index: 1, kind: input, shape index: {}]   ;;  %s84_s2 = inlined_call_operand.<no memory space> [shape: f32[1], index: 2, kind: input, shape index: {}]   ;;  %s85_s3 = inlined_call_operand.vmem [shape: f32[8,128], index: 3, kind: output, shape index: {}]  }
   0x1   :  { %s18_s14 = smul.u32 2654435769, %s82_s0  ;;  %v40_v17 = vstv %s83_s1  ;;  %v43_v19 = vstv %s84_s2 }
   0x2   :  { %v21_v1 = vshrl.u32 %v20_v0, 7  ;;  %v23_v2 = vand.u32 127, %v20_v0 }
   0x3   :  { %s19_s15 = sadd.s32 1365458477, %s18_s14 }
   0x4   :  { %v24_v3 = vmul.u32 128, %v21_v1  ;;  %v26_v4 = vstv %s19_s15 }
   0x6   :  { %v25_v5 = vadd.s32 %v24_v3, %v23_v2 }
   0x8   :  { %v27_v6 = vadd.s32 %v26_v4, %v25_v5 }
   0xa   :  { %v28_v7 = vshrl.u32 %v27_v6, 16 }
   0xc   :  { %v29_v8 = vxor.u32 %v28_v7, %v27_v6 }
   0xe   :  { %v30_v9 = vmul.u32 2146121005, %v29_v8 }
  0x10   :  { %v31_v10 = vshrl.u32 %v30_v9, 15 }
  0x12   :  { %v32_v11 = vxor.u32 %v31_v10, %v30_v9 }
  0x14   :  { %v33_v12 = vmul.u32 2221713035, %v32_v11 }
  0x16   :  { %v34_v13 = vshrl.u32 %v33_v12, 16 }
  0x18   :  { %v35_v14 = vxor.u32 %v34_v13, %v33_v12 }
  0x1a   :  { %v36_v15 = vshrl.u32 %v35_v14, 8 }
  0x1c   :  { %v37_v16 = vcvt.s32.f32 %v36_v15 }
  0x1e   :  { %v38_v18 = vmul.f32 5.9604645e-08, %v37_v16 }
  0x20   :  { %v41_v20 = vmul.f32 %v40_v17, %v38_v18 }
  0x22   :  { %v44_v21 = vadd.f32 %v43_v19, %v41_v20 }
  0x24   :  { %45 = vst [vmem:[%s85_s3] sm:$0xff] %v44_v21 }

</bundles_post_ra>
